<compile_context>
chip_gen: v7x
topology: tpu7x:2x2x1
jax: 0.10.0
libtpu: 0.0.40
codegen_flags: <defaults>
</compile_context>

<pallas_src>
import functools

import jax
import jax.numpy as jnp
from jax.experimental import pallas as pl
from jax.experimental.pallas import tpu as pltpu

_LANES = 128

# Odd 32-bit mixing constants (golden ratio / murmur-style) + lowbias32 finalizer.
_C_IDX = 0x9E3779B1
_C_SEED = 0x85EBCA77
_M1 = 0x7FEB352D
_M2 = 0x846CA68B


def _dropout_kernel(seed_ref, x_ref, o_ref, *, threshold, scale):
    rows, cols = x_ref.shape
    block_elems = rows * cols

    # Global element index of every lane in this block. Stateless counter ->
    # identical masks regardless of tiling, safe for parallel grid steps.
    row_ids = jax.lax.broadcasted_iota(jnp.uint32, (rows, cols), 0)
    col_ids = jax.lax.broadcasted_iota(jnp.uint32, (rows, cols), 1)
    base = pl.program_id(0).astype(jnp.uint32) * jnp.uint32(block_elems)
    idx = base + row_ids * jnp.uint32(cols) + col_ids

    # Hash (seed, idx) -> uniform uint32. Seed is multiplied by an odd
    # constant so nearby base seeds give decorrelated streams.
    seed = seed_ref[0].astype(jnp.uint32)
    key = idx * jnp.uint32(_C_IDX) + seed * jnp.uint32(_C_SEED)
    key = key ^ (key >> 16)
    key = key * jnp.uint32(_M1)
    key = key ^ (key >> 15)
    key = key * jnp.uint32(_M2)
    key = key ^ (key >> 16)

    # Integer threshold compare: drop iff key < p * 2^32 (no shift/convert/fmul).
    keep = key >= jnp.uint32(threshold)
    x = x_ref[...]
    o_ref[...] = jnp.where(keep, x * jnp.asarray(scale, x.dtype), jnp.zeros_like(x))


def _choose_layout(n):
    """Pick a lane-dense slab width; avoid a pad copy whenever possible."""
    for w in (4096, 2048, 1024, 512, 256, 128):
        if n % w == 0:
            return w, 0
    # No nice divisor: pad the tail (the only path that pays an extra copy).
    w = 1024 if n >= 1024 else _LANES
    return w, (-n) % w


def fairseq_dropout(x, p, seed, *, training=True, apply_during_inference=False,
                    target_block_bytes=1 << 20):
    """Pallas implementation of FairseqDropout.forward."""
    p = float(p)
    if not (p > 0.0 and (training or apply_during_inference)):
        return x                   # identity path, same as the PyTorch module
    if p >= 1.0:
        return jnp.zeros_like(x)   # F.dropout(p=1) zeroes everything

    orig_shape = x.shape
    n = x.size
    itemsize = jnp.dtype(x.dtype).itemsize
    sublane = max(8, 32 // max(itemsize, 1))  # 8 for f32, 16 bf16, 32 int8/fp8

    width, pad = _choose_layout(n)
    flat = jnp.reshape(x, (-1,))
    if pad:
        # TODO(synk): this pad materializes one extra copy; only hit when no
        # lane width in {128..4096} divides the element count.
        flat = jnp.pad(flat, (0, pad))
    rows = (n + pad) // width
    x2d = jnp.reshape(flat, (rows, width))

    # ~target_block_bytes per block, rows a multiple of the packed sublane
    # count; small inputs fall back to a single full-extent block.
    row_tile = max(sublane,
                   (target_block_bytes // (width * itemsize)) // sublane * sublane)
    if row_tile >= rows:
        row_tile = rows
    grid = (pl.cdiv(rows, row_tile),)

    threshold = min(int(round(p * (1 << 32))), (1 << 32) - 1)
    scale = 1.0 / (1.0 - p)
    seed_arr = jnp.asarray([seed], dtype=jnp.int32)

    out2d = pl.pallas_call(
        functools.partial(_dropout_kernel, threshold=threshold, scale=scale),
        out_shape=jax.ShapeDtypeStruct((rows, width), x.dtype),
        grid_spec=pltpu.PrefetchScalarGridSpec(
            num_scalar_prefetch=1,
            grid=grid,
            in_specs=[pl.BlockSpec((row_tile, width), lambda i, seed: (i, 0))],
            out_specs=pl.BlockSpec((row_tile, width), lambda i, seed: (i, 0)),
        ),
        compiler_params=pltpu.CompilerParams(
            dimension_semantics=("parallel",),  # stateless hash -> grid steps independent
        ),
    )(seed_arr, x2d)

    out = jnp.reshape(out2d, (-1,))
    if pad:
        out = out[:n]
    return jnp.reshape(out, orig_shape)


if __name__ == "__main__":
    key = jax.random.PRNGKey(0)
    # NCHW-style activation, like what FairseqDropout would see wrapped around a conv.
    x = jax.random.normal(key, (2, 4, 16, 16), dtype=jnp.float32)

    p = 0.5
    y = jax.block_until_ready(fairseq_dropout(x, p=p, seed=1234, training=True))

    # Light sanity checks on dropout semantics.
    assert y.shape == x.shape and y.dtype == x.dtype
    zero_frac = float(jnp.mean(y == 0.0))
    assert 0.3 < zero_frac < 0.7, f"unexpected drop fraction {zero_frac}"
    # Surviving elements must be x / (1 - p).
    kept = y != 0.0
    assert bool(jnp.allclose(jnp.where(kept, y, 0.0),
                             jnp.where(kept, x / (1.0 - p), 0.0), rtol=1e-6))

    # Determinism: same seed -> same mask.
    y2 = jax.block_until_ready(fairseq_dropout(x, p=p, seed=1234, training=True))
    assert bool(jnp.array_equal(y, y2))

    # Inference / p == 0 paths are identity.
    y_eval = jax.block_until_ready(fairseq_dropout(x, p=p, seed=1234, training=False))
    assert bool(jnp.array_equal(y_eval, x))
    y_p0 = jax.block_until_ready(fairseq_dropout(x, p=0.0, seed=1234, training=True))
    assert bool(jnp.array_equal(y_p0, x))

    print("KERNEL_OK")
</pallas_src>

<mosaic_0001>
module attributes {stable_mosaic.version = 11 : i64} {
  func.func @_dropout_kernel(%arg0: i32, %arg1: memref<1xi32, #tpu.memory_space<smem>>, %arg2: memref<1x2048xf32, #tpu.memory_space<vmem>>, %arg3: memref<1x2048xf32, #tpu.memory_space<vmem>>) attributes {dimension_semantics = [#tpu.dimension_semantics<parallel>], iteration_bounds = array<i64: 1>, scalar_prefetch = 1 : i64, scratch_operands = 0 : i64, tpu.core_type = #tpu.core_type<tc>, window_params = [{transform_indices = @transform_0, window_bounds = array<i64: 1, 2048>}, {transform_indices = @transform_1, window_bounds = array<i64: 1, 2048>}]} {
    %0 = tpu.iota {dimensions = array<i32: 0>} : vector<1x2048xi32>
    %1 = tpu.iota {dimensions = array<i32: 1>} : vector<1x2048xi32>
    %c2048_i32 = arith.constant 2048 : i32
    %2 = arith.muli %arg0, %c2048_i32 : i32
    %c2048_i32_0 = arith.constant 2048 : i32
    %3 = vector.broadcast %c2048_i32_0 : i32 to vector<1x2048xi32>
    %4 = arith.muli %0, %3 : vector<1x2048xi32>
    %5 = vector.broadcast %2 : i32 to vector<1x2048xi32>
    %6 = arith.addi %5, %4 : vector<1x2048xi32>
    %7 = arith.addi %6, %1 : vector<1x2048xi32>
    %c0 = arith.constant 0 : index
    %8 = memref.load %arg1[%c0] : memref<1xi32, #tpu.memory_space<smem>>
    %c-1640531535_i32 = arith.constant -1640531535 : i32
    %9 = vector.broadcast %c-1640531535_i32 : i32 to vector<1x2048xi32>
    %10 = arith.muli %7, %9 : vector<1x2048xi32>
    %c-2048144777_i32 = arith.constant -2048144777 : i32
    %11 = arith.muli %8, %c-2048144777_i32 : i32
    %12 = vector.broadcast %11 : i32 to vector<1x2048xi32>
    %13 = arith.addi %10, %12 : vector<1x2048xi32>
    %c16_i32 = arith.constant 16 : i32
    %14 = vector.broadcast %c16_i32 : i32 to vector<1x2048xi32>
    %15 = arith.shrui %13, %14 : vector<1x2048xi32>
    %16 = arith.xori %13, %15 : vector<1x2048xi32>
    %c2146121005_i32 = arith.constant 2146121005 : i32
    %17 = vector.broadcast %c2146121005_i32 : i32 to vector<1x2048xi32>
    %18 = arith.muli %16, %17 : vector<1x2048xi32>
    %c15_i32 = arith.constant 15 : i32
    %19 = vector.broadcast %c15_i32 : i32 to vector<1x2048xi32>
    %20 = arith.shrui %18, %19 : vector<1x2048xi32>
    %21 = arith.xori %18, %20 : vector<1x2048xi32>
    %c-2073254261_i32 = arith.constant -2073254261 : i32
    %22 = vector.broadcast %c-2073254261_i32 : i32 to vector<1x2048xi32>
    %23 = arith.muli %21, %22 : vector<1x2048xi32>
    %c16_i32_1 = arith.constant 16 : i32
    %24 = vector.broadcast %c16_i32_1 : i32 to vector<1x2048xi32>
    %25 = arith.shrui %23, %24 : vector<1x2048xi32>
    %26 = arith.xori %23, %25 : vector<1x2048xi32>
    %c-2147483648_i32 = arith.constant -2147483648 : i32
    %27 = vector.broadcast %c-2147483648_i32 : i32 to vector<1x2048xi32>
    %28 = arith.cmpi uge, %26, %27 : vector<1x2048xi32>
    %c0_2 = arith.constant 0 : index
    %c0_3 = arith.constant 0 : index
    %29 = vector.load %arg2[%c0_2, %c0_3] : memref<1x2048xf32, #tpu.memory_space<vmem>>, vector<1x2048xf32>
    %cst = arith.constant 2.000000e+00 : f32
    %30 = vector.broadcast %cst : f32 to vector<1x2048xf32>
    %31 = arith.mulf %29, %30 : vector<1x2048xf32>
    %cst_4 = arith.constant 0.000000e+00 : f32
    %32 = vector.broadcast %cst_4 : f32 to vector<1x2048xf32>
    %33 = arith.select %28, %31, %32 : vector<1x2048xi1>, vector<1x2048xf32>
    %c0_5 = arith.constant 0 : index
    %c0_6 = arith.constant 0 : index
    %34 = vector.load %arg3[%c0_5, %c0_6] : memref<1x2048xf32, #tpu.memory_space<vmem>>, vector<1x2048xf32>
    tpu.vector_store %arg3[%c0_5, %c0_6], %33 {strides = array<i32>} : memref<1x2048xf32, #tpu.memory_space<vmem>>, vector<1x2048xf32>,
    return
  }
  func.func @transform_0(%arg0: i32, %arg1: memref<1xi32, #tpu.memory_space<smem>>) -> (i32, i32) {
    %c0_i32 = arith.constant 0 : i32
    %c0_i32_0 = arith.constant 0 : i32
    return %arg0, %c0_i32 : i32, i32
  }
  func.func @transform_1(%arg0: i32, %arg1: memref<1xi32, #tpu.memory_space<smem>>) -> (i32, i32) {
    %c0_i32 = arith.constant 0 : i32
    %c0_i32_0 = arith.constant 0 : i32
    return %arg0, %c0_i32 : i32, i32
  }
}

</mosaic_0001>

<bundles_post_ra>
// kernel: tpu_custom_call.1
= control target key start
LH: loop header
LB: loop body
LE: loop exit
PB: predicated region body
PF: predicated region fallthrough
CT: control target
= control target key end

     0   :  { %8 = vsyncpa [#allocation5], 0  ;;  %s693_s0 = inlined_call_operand.<no memory space> [shape: s32[1], index: 0, kind: input, shape index: {}]   ;;  %s694_s1 = inlined_call_operand.hbm [shape: f32[1,2048], index: 1, kind: input, shape index: {}]   ;;  %s695_s2 = inlined_call_operand.hbm [shape: f32[1,2048], index: 2, kind: output, shape index: {}]  }
   0x1   :  { %9 = vsyncpa [#allocation6], 0  ;;  %s527_s9 = smov [#allocation4]   ;;  %s479_s13 = scalar_lea.hbm %s694_s1, 256 }
   0x2   :  { %s16_s10 = sshll.u32 %s527_s9, 4  ;;  %p480_p0 = scmp.ne.s32.totalorder %s694_s1, %s479_s13  ;;  %s17_s10 = int_to_ptr.vmem [resolvable:$true] %s16_s10 }
   0x3   :  { %p483_p1 = scmp.lt.u32.totalorder %s479_s13, %s694_s1 }
   0x5   :  { %p485_p2 = pnand %p483_p1, %p480_p0 }
   0x7   :  { %488 = shalt.err (!%p485_p2)
}
   0x8   :  { %s489_s18 = scalar_lea.vmem %s17_s10, 256  ;;  %p494_p4 = scmp.lt.s32.totalorder %s17_s10, %s17_s10 }
   0x9   :  { %p490_p3 = scmp.ne.s32.totalorder %s17_s10, %s489_s18  ;;  %p495_p5 = scmp.lt.s32.totalorder %s489_s18, %s489_s18 }
   0xb   :  { %p496_p6 = por %p495_p5, %p494_p4 }
   0xd   :  { %p497_p7 = pnand %p496_p6, %p490_p3 }
   0xf   :  { %500 = shalt.err (!%p497_p7)
}
  0x10   :  { %19 = dma.hbm_to_vmem [thread:$0]  %s694_s1, 256, %s17_s10, [#allocation5]  }
  0x11   :  { %523 = dma.done.wait [#allocation5], 256  }
  0x12   :  { %524 = vsyncadd [#allocation5], 4294967040  ;;  %v23_v0 = vlaneseq  ;;  %s79_s23 = smul.u32 2246822519, %s693_s0  ;;  %v528_v1 = vmov 1966171168  }
  0x13   :  { %v560_v2 = vunpack.c.l.s4 %v528_v1  ;;  %v241_v23 = vld [vmem:[#allocation4] sm:$0xff]  ;;  %v242_v24 = vld [vmem:[#allocation4 + $0x8] sm:$0xff]  ;;  %s529_s0 = smov [#allocation7]  }
  0x14   :  { %v26_v3 = vand.u32 127, %v23_v0  ;;  %v562_v4 = vshrl.u32 %v23_v0, 7  ;;  %v564_v5 = vstv %s79_s23  ;;  %v568_v25 = vmul.f32 2.0, %v241_v23  ;;  %s467_s1 = sshll.u32 %s529_s0, 4  ;;  %s468_s1 = int_to_ptr.vmem [resolvable:$true] %s467_s1 }
  0x15   :  { %v570_v26 = vmul.f32 2.0, %v242_v24  ;;  %s501_s24 = scalar_lea.vmem %s468_s1, 256  ;;  %p506_p9 = scmp.lt.s32.totalorder %s468_s1, %s468_s1 }
  0x16   :  { %v27_v7 = vadd.s32 128, %v26_v3  ;;  %v28_v8 = vadd.s32 256, %v26_v3  ;;  %v29_v9 = vadd.s32 384, %v26_v3  ;;  %v30_v10 = vadd.s32 512, %v26_v3  ;;  %p502_p8 = scmp.ne.s32.totalorder %s468_s1, %s501_s24  ;;  %p507_p10 = scmp.lt.s32.totalorder %s501_s24, %s501_s24 }
  0x17   :  { %v31_v11 = vadd.s32 640, %v26_v3  ;;  %v32_v12 = vadd.s32 768, %v26_v3  ;;  %v33_v13 = vadd.s32 896, %v26_v3  ;;  %v34_v14 = vadd.s32 1024, %v26_v3 }
  0x18   :  { %v35_v15 = vadd.s32 1152, %v26_v3  ;;  %v36_v16 = vadd.s32 1280, %v26_v3  ;;  %v37_v17 = vadd.s32 1408, %v26_v3  ;;  %v38_v18 = vadd.s32 1536, %v26_v3  ;;  %p508_p11 = por %p507_p10, %p506_p9 }
  0x19   :  { %v39_v19 = vadd.s32 1664, %v26_v3  ;;  %v40_v20 = vadd.s32 1792, %v26_v3  ;;  %v41_v21 = vadd.s32 1920, %v26_v3  ;;  %v43_v22 = vmul.u32 2048, %v562_v4 }
  0x1a   :  { %v249_v27 = vsub.s32 0, %v562_v4  ;;  %v253_v28 = vsub.s32 1, %v562_v4  ;;  %v257_v51 = vsub.s32 2, %v562_v4  ;;  %v261_v52 = vsub.s32 3, %v562_v4  ;;  %p509_p12 = pnand %p508_p11, %p502_p8 }
  0x1b   :  { %v46_v29 = vadd.s32 %v43_v22, %v26_v3  ;;  %v47_v30 = vadd.s32 %v43_v22, %v27_v7  ;;  %v48_v31 = vadd.s32 %v43_v22, %v28_v8  ;;  %v49_v32 = vadd.s32 %v43_v22, %v29_v9 }
  0x1c   :  { %v50_v33 = vadd.s32 %v43_v22, %v30_v10  ;;  %v51_v34 = vadd.s32 %v43_v22, %v31_v11  ;;  %v52_v35 = vadd.s32 %v43_v22, %v32_v12  ;;  %v53_v36 = vadd.s32 %v43_v22, %v33_v13 }
  0x1d   :  { %v54_v37 = vadd.s32 %v43_v22, %v34_v14  ;;  %v55_v38 = vadd.s32 %v43_v22, %v35_v15  ;;  %v56_v39 = vadd.s32 %v43_v22, %v36_v16  ;;  %v57_v40 = vadd.s32 %v43_v22, %v37_v17 }
  0x1e   :  { %v58_v41 = vadd.s32 %v43_v22, %v38_v18  ;;  %v59_v42 = vadd.s32 %v43_v22, %v39_v19  ;;  %v60_v43 = vadd.s32 %v43_v22, %v40_v20  ;;  %v61_v44 = vadd.s32 %v43_v22, %v41_v21 }
  0x1f   :  { %v63_v45 = vmul.u32 2654435761, %v46_v29  ;;  %v64_v46 = vmul.u32 2654435761, %v47_v30  ;;  %v577_v47 = vrot.slane %v568_v25, %v249_v27  ;;  %v582_v48 = vrot.slane %v568_v25, %v253_v28 }
  0x20   :  { %v65_v49 = vmul.u32 2654435761, %v48_v31  ;;  %v66_v50 = vmul.u32 2654435761, %v49_v32 }
  0x21   :  { %v67_v53 = vmul.u32 2654435761, %v50_v33  ;;  %v68_v54 = vmul.u32 2654435761, %v51_v34  ;;  %v81_v55 = vadd.s32 %v564_v5, %v63_v45  ;;  %v82_v56 = vadd.s32 %v564_v5, %v64_v46 }
  0x22   :  { %v69_v57 = vmul.u32 2654435761, %v52_v35  ;;  %v70_v58 = vmul.u32 2654435761, %v53_v36  ;;  %v83_v59 = vadd.s32 %v564_v5, %v65_v49  ;;  %v84_v60 = vadd.s32 %v564_v5, %v66_v50 }
  0x23   :  { %v71_v61 = vmul.u32 2654435761, %v54_v37  ;;  %v72_v62 = vmul.u32 2654435761, %v55_v38  ;;  %v85_v63 = vadd.s32 %v564_v5, %v67_v53  ;;  %v86_v0 = vadd.s32 %v564_v5, %v68_v54 }
  0x24   :  { %v73_v1 = vmul.u32 2654435761, %v56_v39  ;;  %v74_v3 = vmul.u32 2654435761, %v57_v40  ;;  %v87_v7 = vadd.s32 %v564_v5, %v69_v57  ;;  %v88_v8 = vadd.s32 %v564_v5, %v70_v58 }
  0x25   :  { %v75_v9 = vmul.u32 2654435761, %v58_v41  ;;  %v76_v10 = vmul.u32 2654435761, %v59_v42  ;;  %v89_v11 = vadd.s32 %v564_v5, %v71_v61  ;;  %v90_v12 = vadd.s32 %v564_v5, %v72_v62 }
  0x26   :  { %v77_v13 = vmul.u32 2654435761, %v60_v43  ;;  %v78_v14 = vmul.u32 2654435761, %v61_v44  ;;  %v91_v15 = vadd.s32 %v564_v5, %v73_v1  ;;  %v92_v16 = vadd.s32 %v564_v5, %v74_v3 }
  0x27   :  { %v93_v17 = vadd.s32 %v564_v5, %v75_v9  ;;  %v94_v18 = vadd.s32 %v564_v5, %v76_v10  ;;  %v97_v19 = vshrl.u32 %v81_v55, 16  ;;  %v98_v20 = vshrl.u32 %v82_v56, 16 }
  0x28   :  { %v95_v21 = vadd.s32 %v564_v5, %v77_v13  ;;  %v96_v22 = vadd.s32 %v564_v5, %v78_v14  ;;  %v99_v23 = vshrl.u32 %v83_v59, 16  ;;  %v100_v24 = vshrl.u32 %v84_v60, 16 }
  0x29   :  { %v101_v29 = vshrl.u32 %v85_v63, 16  ;;  %v102_v30 = vshrl.u32 %v86_v0, 16  ;;  %v103_v31 = vshrl.u32 %v87_v7, 16  ;;  %v104_v32 = vshrl.u32 %v88_v8, 16 }
  0x2a   :  { %v105_v33 = vshrl.u32 %v89_v11, 16  ;;  %v106_v34 = vshrl.u32 %v90_v12, 16  ;;  %v107_v35 = vshrl.u32 %v91_v15, 16  ;;  %v108_v36 = vshrl.u32 %v92_v16, 16 }
  0x2b   :  { %v109_v37 = vshrl.u32 %v93_v17, 16  ;;  %v110_v38 = vshrl.u32 %v94_v18, 16  ;;  %v111_v39 = vshrl.u32 %v95_v21, 16  ;;  %v112_v40 = vshrl.u32 %v96_v22, 16 }
  0x2c   :  { %v113_v41 = vxor.u32 %v97_v19, %v81_v55  ;;  %v114_v42 = vxor.u32 %v98_v20, %v82_v56  ;;  %v115_v43 = vxor.u32 %v99_v23, %v83_v59  ;;  %v116_v44 = vxor.u32 %v100_v24, %v84_v60 }
  0x2d   :  { %v117_v45 = vxor.u32 %v101_v29, %v85_v63  ;;  %v118_v5 = vxor.u32 %v102_v30, %v86_v0  ;;  %v119_v46 = vxor.u32 %v103_v31, %v87_v7  ;;  %v120_v49 = vxor.u32 %v104_v32, %v88_v8 }
  0x2e   :  { %v121_v50 = vxor.u32 %v105_v33, %v89_v11  ;;  %v122_v53 = vxor.u32 %v106_v34, %v90_v12  ;;  %v123_v54 = vxor.u32 %v107_v35, %v91_v15  ;;  %v124_v57 = vxor.u32 %v108_v36, %v92_v16 }
  0x2f   :  { %v125_v58 = vxor.u32 %v109_v37, %v93_v17  ;;  %v126_v61 = vxor.u32 %v110_v38, %v94_v18  ;;  %v127_v62 = vxor.u32 %v111_v39, %v95_v21  ;;  %v128_v1 = vxor.u32 %v112_v40, %v96_v22 }
  0x30   :  { %v129_v3 = vmul.u32 2146121005, %v113_v41  ;;  %v130_v9 = vmul.u32 2146121005, %v114_v42  ;;  %v605_v55 = vrot.slane %v568_v25, %v257_v51  ;;  %v610_v56 = vrot.slane %v568_v25, %v261_v52 }
  0x31   :  { %v131_v59 = vmul.u32 2146121005, %v115_v43  ;;  %v132_v60 = vmul.u32 2146121005, %v116_v44  ;;  %v697_v63 = vsub.s32 4, %v562_v4  ;;  %v696_v0 = vsub.s32 5, %v562_v4 }
  0x32   :  { %v133_v7 = vmul.u32 2146121005, %v117_v45  ;;  %v134_v8 = vmul.u32 2146121005, %v118_v5  ;;  %v145_v10 = vshrl.u32 %v129_v3, 15  ;;  %v146_v11 = vshrl.u32 %v130_v9, 15 }
  0x33   :  { %v135_v12 = vmul.u32 2146121005, %v119_v46  ;;  %v136_v13 = vmul.u32 2146121005, %v120_v49  ;;  %v147_v14 = vshrl.u32 %v131_v59, 15  ;;  %v148_v15 = vshrl.u32 %v132_v60, 15 }
  0x34   :  { %v137_v16 = vmul.u32 2146121005, %v121_v50  ;;  %v138_v17 = vmul.u32 2146121005, %v122_v53  ;;  %v149_v18 = vshrl.u32 %v133_v7, 15  ;;  %v150_v19 = vshrl.u32 %v134_v8, 15 }
  0x35   :  { %v139_v20 = vmul.u32 2146121005, %v123_v54  ;;  %v140_v21 = vmul.u32 2146121005, %v124_v57  ;;  %v151_v22 = vshrl.u32 %v135_v12, 15  ;;  %v152_v23 = vshrl.u32 %v136_v13, 15 }
  0x36   :  { %v141_v24 = vmul.u32 2146121005, %v125_v58  ;;  %v142_v29 = vmul.u32 2146121005, %v126_v61  ;;  %v153_v30 = vshrl.u32 %v137_v16, 15  ;;  %v154_v31 = vshrl.u32 %v138_v17, 15 }
  0x37   :  { %v143_v32 = vmul.u32 2146121005, %v127_v62  ;;  %v144_v33 = vmul.u32 2146121005, %v128_v1  ;;  %v155_v34 = vshrl.u32 %v139_v20, 15  ;;  %v156_v35 = vshrl.u32 %v140_v21, 15 }
  0x38   :  { %v157_v36 = vshrl.u32 %v141_v24, 15  ;;  %v158_v37 = vshrl.u32 %v142_v29, 15  ;;  %v161_v38 = vxor.u32 %v145_v10, %v129_v3  ;;  %v162_v39 = vxor.u32 %v146_v11, %v130_v9 }
  0x39   :  { %v159_v40 = vshrl.u32 %v143_v32, 15  ;;  %v160_v41 = vshrl.u32 %v144_v33, 15  ;;  %v163_v42 = vxor.u32 %v147_v14, %v131_v59  ;;  %v164_v43 = vxor.u32 %v148_v15, %v132_v60 }
  0x3a   :  { %v165_v44 = vxor.u32 %v149_v18, %v133_v7  ;;  %v166_v45 = vxor.u32 %v150_v19, %v134_v8  ;;  %v167_v5 = vxor.u32 %v151_v22, %v135_v12  ;;  %v168_v46 = vxor.u32 %v152_v23, %v136_v13 }
  0x3b   :  { %v169_v49 = vxor.u32 %v153_v30, %v137_v16  ;;  %v170_v50 = vxor.u32 %v154_v31, %v138_v17  ;;  %v171_v53 = vxor.u32 %v155_v34, %v139_v20  ;;  %v172_v54 = vxor.u32 %v156_v35, %v140_v21 }
  0x3c   :  { %v173_v57 = vxor.u32 %v157_v36, %v141_v24  ;;  %v174_v58 = vxor.u32 %v158_v37, %v142_v29  ;;  %v175_v61 = vxor.u32 %v159_v40, %v143_v32  ;;  %v176_v62 = vxor.u32 %v160_v41, %v144_v33 }
  0x3d   :  { %v177_v1 = vmul.u32 2221713035, %v161_v38  ;;  %v178_v6 = vmul.u32 2221713035, %v162_v39  ;;  %v617_v3 = vrot.slane %v568_v25, %v697_v63  ;;  %v622_v9 = vrot.slane %v568_v25, %v696_v0 }
  0x3e   :  { %v179_v59 = vmul.u32 2221713035, %v163_v42  ;;  %v180_v60 = vmul.u32 2221713035, %v164_v43  ;;  %v273_v7 = vsub.s32 6, %v562_v4  ;;  %v277_v8 = vsub.s32 7, %v562_v4 }
  0x3f   :  { %v181_v10 = vmul.u32 2221713035, %v165_v44  ;;  %v182_v11 = vmul.u32 2221713035, %v166_v45  ;;  %v193_v12 = vshrl.u32 %v177_v1, 16  ;;  %v194_v13 = vshrl.u32 %v178_v6, 16 }
  0x40   :  { %v183_v14 = vmul.u32 2221713035, %v167_v5  ;;  %v184_v15 = vmul.u32 2221713035, %v168_v46  ;;  %v195_v16 = vshrl.u32 %v179_v59, 16  ;;  %v196_v17 = vshrl.u32 %v180_v60, 16 }
  0x41   :  { %v185_v18 = vmul.u32 2221713035, %v169_v49  ;;  %v186_v19 = vmul.u32 2221713035, %v170_v50  ;;  %v197_v20 = vshrl.u32 %v181_v10, 16  ;;  %v198_v21 = vshrl.u32 %v182_v11, 16 }
  0x42   :  { %v187_v22 = vmul.u32 2221713035, %v171_v53  ;;  %v188_v23 = vmul.u32 2221713035, %v172_v54  ;;  %v199_v24 = vshrl.u32 %v183_v14, 16  ;;  %v200_v29 = vshrl.u32 %v184_v15, 16 }
  0x43   :  { %v189_v30 = vmul.u32 2221713035, %v173_v57  ;;  %v190_v31 = vmul.u32 2221713035, %v174_v58  ;;  %v201_v32 = vshrl.u32 %v185_v18, 16  ;;  %v202_v33 = vshrl.u32 %v186_v19, 16 }
  0x44   :  { %v191_v34 = vmul.u32 2221713035, %v175_v61  ;;  %v192_v35 = vmul.u32 2221713035, %v176_v62  ;;  %v203_v36 = vshrl.u32 %v187_v22, 16  ;;  %v204_v37 = vshrl.u32 %v188_v23, 16 }
  0x45   :  { %v205_v38 = vshrl.u32 %v189_v30, 16  ;;  %v206_v39 = vshrl.u32 %v190_v31, 16  ;;  %v209_v40 = vxor.u32 %v193_v12, %v177_v1  ;;  %v210_v41 = vxor.u32 %v194_v13, %v178_v6 }
  0x46   :  { %v207_v42 = vshrl.u32 %v191_v34, 16  ;;  %v208_v43 = vshrl.u32 %v192_v35, 16  ;;  %v211_v44 = vxor.u32 %v195_v16, %v179_v59  ;;  %v212_v45 = vxor.u32 %v196_v17, %v180_v60 }
  0x47   :  { %v213_v5 = vxor.u32 %v197_v20, %v181_v10  ;;  %v214_v46 = vxor.u32 %v198_v21, %v182_v11  ;;  %v215_v49 = vxor.u32 %v199_v24, %v183_v14  ;;  %v216_v50 = vxor.u32 %v200_v29, %v184_v15 }
  0x48   :  { %v217_v53 = vxor.u32 %v201_v32, %v185_v18  ;;  %v218_v54 = vxor.u32 %v202_v33, %v186_v19  ;;  %v219_v57 = vxor.u32 %v203_v36, %v187_v22  ;;  %v220_v58 = vxor.u32 %v204_v37, %v188_v23 }
  0x49   :  { %v221_v61 = vxor.u32 %v205_v38, %v189_v30  ;;  %v222_v62 = vxor.u32 %v206_v39, %v190_v31  ;;  %v223_v0 = vxor.u32 %v207_v42, %v191_v34  ;;  %v224_v63 = vxor.u32 %v208_v43, %v192_v35 }
  0x4a   :  { %vm225_vm0 = vcmp.ge.u32.totalorder %v209_v40, 2147483648  ;;  %vm226_vm1 = vcmp.ge.u32.totalorder %v210_v41, 2147483648  ;;  %vm227_vm2 = vcmp.ge.u32.totalorder %v211_v44, 2147483648  ;;  %vm228_vm3 = vcmp.ge.u32.totalorder %v212_v45, 2147483648 }
  0x4b   :  { %vm229_vm4 = vcmp.ge.u32.totalorder %v213_v5, 2147483648  ;;  %vm230_vm5 = vcmp.ge.u32.totalorder %v214_v46, 2147483648  ;;  %vm231_vm6 = vcmp.ge.u32.totalorder %v215_v49, 2147483648  ;;  %vm232_vm7 = vcmp.ge.u32.totalorder %v216_v50, 2147483648 }
  0x4c   :  { %vm233_vm8 = vcmp.ge.u32.totalorder %v217_v53, 2147483648  ;;  %vm234_vm9 = vcmp.ge.u32.totalorder %v218_v54, 2147483648  ;;  %vm235_vm10 = vcmp.ge.u32.totalorder %v219_v57, 2147483648  ;;  %vm236_vm11 = vcmp.ge.u32.totalorder %v220_v58, 2147483648 }
  0x4d   :  { %vm237_vm12 = vcmp.ge.u32.totalorder %v221_v61, 2147483648  ;;  %vm238_vm13 = vcmp.ge.u32.totalorder %v222_v62, 2147483648  ;;  %vm239_vm14 = vcmp.ge.u32.totalorder %v223_v0, 2147483648  ;;  %vm240_vm15 = vcmp.ge.u32.totalorder %v224_v63, 2147483648 }
  0x4e   :  { %v274_v6 = vrot.slane %v568_v25, %v273_v7  ;;  %v278_v1 = vrot.slane %v568_v25, %v277_v8  ;;  %v282_v59 = vrot.slane %v570_v26, %v249_v27  ;;  %v286_v60 = vrot.slane %v570_v26, %v253_v28 }
  0x4f   :  { %v290_v10 = vrot.slane %v570_v26, %v257_v51  ;;  %v294_v11 = vrot.slane %v570_v26, %v261_v52  ;;  %v698_v12 = vsub.s32 4, %v562_v4  ;;  %v699_v13 = vsub.s32 5, %v562_v4 }
  0x50   :  { %v306_v28 = vrot.slane %v570_v26, %v273_v7  ;;  %v310_v51 = vrot.slane %v570_v26, %v277_v8  ;;  %v327_v14 = vsel %vm225_vm0, %v577_v47, 0.0  ;;  %v328_v52 = vsel %vm226_vm1, %v582_v48, 0.0 }
  0x51   :  { %v298_v25 = vrot.slane %v570_v26, %v698_v12  ;;  %v302_v27 = vrot.slane %v570_v26, %v699_v13  ;;  %v329_v15 = vsel %vm227_vm2, %v605_v55, 0.0  ;;  %v330_v16 = vsel %vm228_vm3, %v610_v56, 0.0 }
  0x52   :  { %v331_v17 = vsel %vm229_vm4, %v617_v3, 0.0  ;;  %v332_v7 = vsel %vm230_vm5, %v622_v9, 0.0  ;;  %v333_v26 = vsel %vm231_vm6, %v274_v6, 0.0  ;;  %v334_v8 = vsel %vm232_vm7, %v278_v1, 0.0 }
  0x53   :  { %v335_v47 = vsel %vm233_vm8, %v282_v59, 0.0  ;;  %v336_v48 = vsel %vm234_vm9, %v286_v60, 0.0  ;;  %v337_v18 = vsel %vm235_vm10, %v290_v10, 0.0  ;;  %v338_v55 = vsel %vm236_vm11, %v294_v11, 0.0 }
  0x54   :  { %v339_v56 = vsel %vm237_vm12, %v298_v25, 0.0  ;;  %v340_v19 = vsel %vm238_vm13, %v302_v27, 0.0  ;;  %v341_v3 = vsel %vm239_vm14, %v306_v28, 0.0  ;;  %v342_v9 = vsel %vm240_vm15, %v310_v51, 0.0 }
  0x55   :  { %v359_v20 = vcombine.low %v327_v14, %v328_v52  ;;  %v360_v21 = vcombine.low %v329_v15, %v330_v16  ;;  %v361_v22 = vcombine.low %v331_v17, %v332_v7  ;;  %v362_v23 = vcombine.low %v333_v26, %v334_v8 }
  0x56   :  { %v700_v24 = vunpack.c.0.s8 %v560_v2  ;;  %v408_v30 = vcombine.low %v335_v47, %v336_v48  ;;  %v409_v31 = vcombine.low %v337_v18, %v338_v55  ;;  %v410_v32 = vcombine.low %v339_v56, %v340_v19 }
  0x57   :  { %v411_v33 = vcombine.low %v341_v3, %v342_v9 }
  0x58   :  { %v368_v29 = vsub.s32 %v700_v24, %v562_v4 }
  0x5a   :  { %v369_v34 = vrot.slane %v359_v20, %v368_v29  ;;  %v376_v35 = vrot.slane %v360_v21, %v368_v29  ;;  %v383_v36 = vrot.slane %v361_v22, %v368_v29  ;;  %v390_v37 = vrot.slane %v362_v23, %v368_v29 }
  0x5b   :  { %v418_v0 = vrot.slane %v408_v30, %v368_v29  ;;  %v425_v38 = vrot.slane %v409_v31, %v368_v29  ;;  %v432_v63 = vrot.slane %v410_v32, %v368_v29  ;;  %v439_v39 = vrot.slane %v411_v33, %v368_v29 }
  0x5c   :  { %v391_v40 = vcombine.low %v369_v34, %v376_v35  ;;  %v392_v41 = vcombine.low %v383_v36, %v390_v37 }
  0x5d   :  { %v440_v42 = vcombine.low %v418_v0, %v425_v38  ;;  %v441_v43 = vcombine.low %v432_v63, %v439_v39 }
  0x5e   :  { %v399_v44 = vrot.slane %v391_v40, %v368_v29  ;;  %v406_v45 = vrot.slane %v392_v41, %v368_v29 }
  0x5f   :  { %v448_v2 = vrot.slane %v440_v42, %v368_v29  ;;  %v455_v4 = vrot.slane %v441_v43, %v368_v29 }
  0x60   :  { %v407_v5 = vcombine.low %v399_v44, %v406_v45 }
  0x61   :  { %v456_v46 = vcombine.low %v448_v2, %v455_v4 }
  0x62   :  { %459 = vst [vmem:[#allocation7] sm:$0xff] %v407_v5 }
  0x63   :  { %460 = vst [vmem:[#allocation7 + $0x8] sm:$0xff] %v456_v46 }
  0x64   :  { %512 = shalt.err (!%p509_p12)
}
  0x65   :  { %s513_s27 = scalar_lea.hbm %s695_s2, 256 }
  0x66   :  { %p514_p13 = scmp.ne.s32.totalorder %s695_s2, %s513_s27  ;;  %p517_p0 = scmp.lt.u32.totalorder %s513_s27, %s695_s2 }
  0x68   :  { %p519_p1 = pnand %p517_p0, %p514_p13 }
  0x6a   :  { %522 = shalt.err (!%p519_p1)
}
  0x6b   :  { %470 = dma.vmem_to_hbm [thread:$0]  %s468_s1, 256, %s695_s2, [#allocation6]  }
  0x6c   :  { %525 = dma.done.wait [#allocation6], 256  }
  0x6d   :  { %526 = vsyncadd [#allocation6], 4294967040 }
  0x6e   :  { %474 = vsyncpa [#allocation5], 1 }
  0x6f   :  { %475 = vsyncpa [#allocation6], 1 }

</bundles_post_ra>
